<compile_context>
chip_gen: v7x
topology: tpu7x:2x2x1
jax: 0.10.0
libtpu: 0.0.40
codegen_flags: <defaults>
</compile_context>

<pallas_src>
import jax
import jax.numpy as jnp
from jax.experimental import pallas as pl
from jax.experimental.pallas import tpu as pltpu


def critic_kernel(x_ref, w1_ref, b1_ref, w2_ref, b2_ref, w3_ref, b3_ref,
                  q_ref):
    # Layer 1: h1 = relu(x @ W1 + b1)   (x already holds cat([states, actions]))
    h1 = jnp.dot(x_ref[...], w1_ref[...], preferred_element_type=jnp.float32)
    h1 = jnp.maximum(h1 + b1_ref[...], 0.0)                 # f32 VPU

    # Layer 2: h2 = relu(h1 @ W2 + b2)  (bf16 operands, f32 accumulate)
    h2 = jnp.dot(h1.astype(jnp.bfloat16), w2_ref[...],
                 preferred_element_type=jnp.float32)
    h2 = jnp.maximum(h2 + b2_ref[...], 0.0)

    # Layer 3: q = h2 @ W3 + b3, W3 pre-transposed to (H2, 1) -> plain MXU
    # matmul, (TB, 1) column output (no hidden transpose of h2).
    q = jnp.dot(h2.astype(jnp.bfloat16), w3_ref[...],
                preferred_element_type=jnp.float32)
    q_ref[...] = q + b3_ref[0, 0]


def _round_up(x, m):
    return ((x + m - 1) // m) * m


def critic_forward(states, actions, params, *, block_b=1024):
    """Pallas forward of Critic(states, actions) -> (B, 1) Q-values."""
    w1, b1, w2, b2, w3, b3 = params
    B = states.shape[0]
    SA, H1 = w1.shape
    H2 = w2.shape[1]

    # Fold cat([states, actions]) + bf16 cast into one tiny wrapper-side op
    # (inputs are (B, 16) -> negligible vs. folding it into the kernel, and it
    # lets layer 1 run as a single MXU dot).
    x = jnp.concatenate([states, actions], axis=-1).astype(jnp.bfloat16)

    # Batch tiling:
    #  * B > 2*block_b : balanced tiles, TB ~= cdiv(B, n_tiles) rounded to 8,
    #    so the last tile isn't nearly empty.
    #  * otherwise     : split into (up to) 2 steps so the "parallel" batch
    #    axis shards across both v7x TensorCores (tiny B -> 1 step).
    if B > 2 * block_b:
        n_tiles = pl.cdiv(B, block_b)
        TB = _round_up(pl.cdiv(B, n_tiles), 8)
    else:
        TB = max(_round_up(pl.cdiv(B, 2), 8), 8)
    Bp = _round_up(B, TB)
    if Bp != B:
        x = jnp.pad(x, ((0, Bp - B), (0, 0)))

    def resident(shape):  # weight/bias tiles: same block every grid step
        return pl.BlockSpec(shape, lambda i: (0, 0))

    q = pl.pallas_call(
        critic_kernel,
        out_shape=jax.ShapeDtypeStruct((Bp, 1), jnp.float32),
        grid=(Bp // TB,),
        in_specs=[
            pl.BlockSpec((TB, SA), lambda i: (i, 0)),            # x tile
            resident((SA, H1)),                                  # W1
            resident((1, H1)),                                   # b1
            resident((H1, H2)),                                  # W2
            resident((1, H2)),                                   # b2
            resident((H2, 1)),                                   # W3 (H2, 1)
            pl.BlockSpec(memory_space=pltpu.MemorySpace.SMEM),   # b3 scalar
        ],
        out_specs=pl.BlockSpec((TB, 1), lambda i: (i, 0)),
        compiler_params=pltpu.CompilerParams(
            dimension_semantics=("parallel",)),
    )(x, w1, b1, w2, b2, w3, b3)

    return q[:B]  # drop batch padding


def init_critic_params(key, state_dim, action_dim, hidden_units=(256, 256)):
    """Deterministic init mirroring nn.Linear default U(-1/sqrt(fan_in), +).

    Weights are stored in bf16 (MXU operands); biases stay f32.
    """
    h1, h2 = hidden_units
    in_dim = state_dim + action_dim

    key, kw, kb = jax.random.split(key, 3)
    bound = 1.0 / (in_dim ** 0.5)
    w1 = jax.random.uniform(kw, (in_dim, h1), jnp.float32, -bound, bound)
    b1 = jax.random.uniform(kb, (1, h1), jnp.float32, -bound, bound)

    key, kw, kb = jax.random.split(key, 3)
    bound = 1.0 / (h1 ** 0.5)
    w2 = jax.random.uniform(kw, (h1, h2), jnp.float32, -bound, bound)
    b2 = jax.random.uniform(kb, (1, h2), jnp.float32, -bound, bound)

    key, kw, kb = jax.random.split(key, 3)
    bound = 1.0 / (h2 ** 0.5)
    w3 = jax.random.uniform(kw, (h2, 1), jnp.float32, -bound, bound)  # (in,out)
    b3 = jax.random.uniform(kb, (1, 1), jnp.float32, -bound, bound)

    return (w1.astype(jnp.bfloat16), b1,
            w2.astype(jnp.bfloat16), b2,
            w3.astype(jnp.bfloat16), b3)


def critic_reference(states, actions, params):
    """Pure-JAX f32 reference matching the PyTorch module (same bf16 weights
    upcast to f32, so only activation casts / MXU rounding differ)."""
    w1, b1, w2, b2, w3, b3 = params
    x = jnp.concatenate([states, actions], axis=-1).astype(jnp.float32)
    h1 = jnp.maximum(x @ w1.astype(jnp.float32) + b1, 0.0)
    h2 = jnp.maximum(h1 @ w2.astype(jnp.float32) + b2, 0.0)
    return h2 @ w3.astype(jnp.float32) + b3


if __name__ == "__main__":
    key = jax.random.PRNGKey(0)
    state_dim, action_dim = 12, 4
    hidden_units = (256, 256)   # module default; MXU N-tile aligned

    k_s, k_a, k_p = jax.random.split(key, 3)
    params = init_critic_params(k_p, state_dim, action_dim, hidden_units)

    # Small primary check (single grid step).
    B = 8
    states = jax.random.normal(k_s, (B, state_dim), jnp.float32)
    actions = jax.random.normal(k_a, (B, action_dim), jnp.float32)
    q = jax.block_until_ready(critic_forward(states, actions, params))
    q_ref = critic_reference(states, actions, params)
    assert q.shape == (B, 1), q.shape
    assert jnp.allclose(q, q_ref, atol=3e-2, rtol=3e-2), (q, q_ref)

    # Secondary check exercising a multi-step grid + batch padding.
    B2 = 40
    k_s2, k_a2 = jax.random.split(jax.random.PRNGKey(1))
    states2 = jax.random.normal(k_s2, (B2, state_dim), jnp.float32)
    actions2 = jax.random.normal(k_a2, (B2, action_dim), jnp.float32)
    q2 = jax.block_until_ready(critic_forward(states2, actions2, params))
    q2_ref = critic_reference(states2, actions2, params)
    assert q2.shape == (B2, 1), q2.shape
    assert jnp.allclose(q2, q2_ref, atol=3e-2, rtol=3e-2), (q2, q2_ref)

    print("KERNEL_OK")
</pallas_src>

<mosaic_0001>
module attributes {stable_mosaic.version = 11 : i64} {
  func.func @critic_kernel(%arg0: i32, %arg1: memref<8x16xbf16, #tpu.memory_space<vmem>>, %arg2: memref<16x256xbf16, #tpu.memory_space<vmem>>, %arg3: memref<1x256xf32, #tpu.memory_space<vmem>>, %arg4: memref<256x256xbf16, #tpu.memory_space<vmem>>, %arg5: memref<1x256xf32, #tpu.memory_space<vmem>>, %arg6: memref<256x1xbf16, #tpu.memory_space<vmem>>, %arg7: memref<1x1xf32, #tpu.memory_space<smem>>, %arg8: memref<8x1xf32, #tpu.memory_space<vmem>>) attributes {dimension_semantics = [#tpu.dimension_semantics<parallel>], iteration_bounds = array<i64: 1>, scalar_prefetch = 0 : i64, scratch_operands = 0 : i64, tpu.core_type = #tpu.core_type<tc>, window_params = [{transform_indices = @transform_0, window_bounds = array<i64: 8, 16>}, {pipeline_mode = #tpu.pipeline_mode<synchronous>, transform_indices = @transform_1, window_bounds = array<i64: 16, 256>}, {pipeline_mode = #tpu.pipeline_mode<synchronous>, transform_indices = @transform_2, window_bounds = array<i64: 1, 256>}, {pipeline_mode = #tpu.pipeline_mode<synchronous>, transform_indices = @transform_3, window_bounds = array<i64: 256, 256>}, {pipeline_mode = #tpu.pipeline_mode<synchronous>, transform_indices = @transform_4, window_bounds = array<i64: 1, 256>}, {pipeline_mode = #tpu.pipeline_mode<synchronous>, transform_indices = @transform_5, window_bounds = array<i64: 256, 1>}, {transform_indices = @transform_6, window_bounds = array<i64: 1, 1>}, {transform_indices = @transform_7, window_bounds = array<i64: 8, 1>}]} {
    %c0 = arith.constant 0 : index
    %c0_0 = arith.constant 0 : index
    %0 = vector.load %arg1[%c0, %c0_0] : memref<8x16xbf16, #tpu.memory_space<vmem>>, vector<8x16xbf16>
    %c0_1 = arith.constant 0 : index
    %c0_2 = arith.constant 0 : index
    %1 = vector.load %arg2[%c0_1, %c0_2] : memref<16x256xbf16, #tpu.memory_space<vmem>>, vector<16x256xbf16>
    %cst = arith.constant dense<0.000000e+00> : vector<8x256xf32>
    %2 = tpu.matmul %0, %1, %cst {dimension_numbers = #tpu.dot_dimension_numbers<[1], [0], [0], [1], [0, 0, 1, 1], [], []>} : vector<8x16xbf16>, vector<16x256xbf16>, vector<8x256xf32> -> vector<8x256xf32>
    %c0_3 = arith.constant 0 : index
    %c0_4 = arith.constant 0 : index
    %3 = vector.load %arg3[%c0_3, %c0_4] : memref<1x256xf32, #tpu.memory_space<vmem>>, vector<1x256xf32>
    %4 = vector.broadcast %3 : vector<1x256xf32> to vector<8x256xf32>
    %5 = arith.addf %2, %4 : vector<8x256xf32>
    %cst_5 = arith.constant 0.000000e+00 : f32
    %6 = vector.broadcast %cst_5 : f32 to vector<8x256xf32>
    %7 = arith.maximumf %5, %6 : vector<8x256xf32>
    %8 = arith.truncf %7 : vector<8x256xf32> to vector<8x256xbf16>
    %c0_6 = arith.constant 0 : index
    %c0_7 = arith.constant 0 : index
    %9 = vector.load %arg4[%c0_6, %c0_7] : memref<256x256xbf16, #tpu.memory_space<vmem>>, vector<256x256xbf16>
    %cst_8 = arith.constant dense<0.000000e+00> : vector<8x256xf32>
    %10 = tpu.matmul %8, %9, %cst_8 {dimension_numbers = #tpu.dot_dimension_numbers<[1], [0], [0], [1], [0, 0, 1, 1], [], []>} : vector<8x256xbf16>, vector<256x256xbf16>, vector<8x256xf32> -> vector<8x256xf32>
    %c0_9 = arith.constant 0 : index
    %c0_10 = arith.constant 0 : index
    %11 = vector.load %arg5[%c0_9, %c0_10] : memref<1x256xf32, #tpu.memory_space<vmem>>, vector<1x256xf32>
    %12 = vector.broadcast %11 : vector<1x256xf32> to vector<8x256xf32>
    %13 = arith.addf %10, %12 : vector<8x256xf32>
    %cst_11 = arith.constant 0.000000e+00 : f32
    %14 = vector.broadcast %cst_11 : f32 to vector<8x256xf32>
    %15 = arith.maximumf %13, %14 : vector<8x256xf32>
    %16 = arith.truncf %15 : vector<8x256xf32> to vector<8x256xbf16>
    %c0_12 = arith.constant 0 : index
    %c0_13 = arith.constant 0 : index
    %17 = vector.load %arg6[%c0_12, %c0_13] : memref<256x1xbf16, #tpu.memory_space<vmem>>, vector<256x1xbf16>
    %cst_14 = arith.constant dense<0.000000e+00> : vector<8x1xf32>
    %18 = tpu.matmul %16, %17, %cst_14 {dimension_numbers = #tpu.dot_dimension_numbers<[1], [0], [0], [1], [0, 0, 1, 1], [], []>} : vector<8x256xbf16>, vector<256x1xbf16>, vector<8x1xf32> -> vector<8x1xf32>
    %c0_15 = arith.constant 0 : index
    %c0_16 = arith.constant 0 : index
    %19 = memref.load %arg7[%c0_15, %c0_16] : memref<1x1xf32, #tpu.memory_space<smem>>
    %20 = vector.broadcast %19 : f32 to vector<8x1xf32>
    %21 = arith.addf %18, %20 : vector<8x1xf32>
    %c0_17 = arith.constant 0 : index
    %c0_18 = arith.constant 0 : index
    %22 = vector.load %arg8[%c0_17, %c0_18] : memref<8x1xf32, #tpu.memory_space<vmem>>, vector<8x1xf32>
    tpu.vector_store %arg8[%c0_17, %c0_18], %21 {strides = array<i32>} : memref<8x1xf32, #tpu.memory_space<vmem>>, vector<8x1xf32>,
    return
  }
  func.func @transform_0(%arg0: i32) -> (i32, i32) {
    %c0_i32 = arith.constant 0 : i32
    %c0_i32_0 = arith.constant 0 : i32
    return %arg0, %c0_i32 : i32, i32
  }
  func.func @transform_1(%arg0: i32) -> (i32, i32) {
    %c0_i32 = arith.constant 0 : i32
    %c0_i32_0 = arith.constant 0 : i32
    %c0_i32_1 = arith.constant 0 : i32
    return %c0_i32, %c0_i32_0 : i32, i32
  }
  func.func @transform_2(%arg0: i32) -> (i32, i32) {
    %c0_i32 = arith.constant 0 : i32
    %c0_i32_0 = arith.constant 0 : i32
    %c0_i32_1 = arith.constant 0 : i32
    return %c0_i32, %c0_i32_0 : i32, i32
  }
  func.func @transform_3(%arg0: i32) -> (i32, i32) {
    %c0_i32 = arith.constant 0 : i32
    %c0_i32_0 = arith.constant 0 : i32
    %c0_i32_1 = arith.constant 0 : i32
    return %c0_i32, %c0_i32_0 : i32, i32
  }
  func.func @transform_4(%arg0: i32) -> (i32, i32) {
    %c0_i32 = arith.constant 0 : i32
    %c0_i32_0 = arith.constant 0 : i32
    %c0_i32_1 = arith.constant 0 : i32
    return %c0_i32, %c0_i32_0 : i32, i32
  }
  func.func @transform_5(%arg0: i32) -> (i32, i32) {
    %c0_i32 = arith.constant 0 : i32
    %c0_i32_0 = arith.constant 0 : i32
    %c0_i32_1 = arith.constant 0 : i32
    return %c0_i32, %c0_i32_0 : i32, i32
  }
  func.func @transform_6(%arg0: i32) -> (i32, i32) {
    %c0_i32 = arith.constant 0 : i32
    %c0_i32_0 = arith.constant 0 : i32
    %c0_i32_1 = arith.constant 0 : i32
    return %c0_i32, %c0_i32_0 : i32, i32
  }
  func.func @transform_7(%arg0: i32) -> (i32, i32) {
    %c0_i32 = arith.constant 0 : i32
    %c0_i32_0 = arith.constant 0 : i32
    return %arg0, %c0_i32 : i32, i32
  }
}

</mosaic_0001>

<bundles_post_ra>
// kernel: tpu_custom_call.1
= control target key start
LH: loop header
LB: loop body
LE: loop exit
PB: predicated region body
PF: predicated region fallthrough
CT: control target
= control target key end

     0   :  { %13 = vsyncpa [#allocation4], 0  ;;  %s710_s24 = smov [#allocation3]   ;;  %s835_s0 = inlined_call_operand.vmem [shape: bf16[8,16], index: 0, kind: input, shape index: {}]   ;;  %s836_s1 = inlined_call_operand.vmem [shape: bf16[16,256], index: 1, kind: input, shape index: {}]   ;;  %s837_s2 = inlined_call_operand.vmem [shape: f32[1,256], index: 2, kind: input, shape index: {}]   ;;  %s838_s3 = inlined_call_operand.hbm [shape: bf16[256,256], index: 3, kind: input, shape index: {}]   ;;  %s839_s4 = inlined_call_operand.vmem [shape: f32[1,256], index: 4, kind: input, shape index: {}]   ;;  %s840_s5 = inlined_call_operand.vmem [shape: bf16[256,1], index: 5, kind: input, shape index: {}]   ;;  %s841_s6 = inlined_call_operand.<no memory space> [shape: f32[1,1], index: 6, kind: input, shape index: {}]   ;;  %s842_s7 = inlined_call_operand.vmem [shape: f32[8,1], index: 7, kind: output, shape index: {}]  }
   0x1   :  { %s25_s25 = sshll.u32 %s710_s24, 4  ;;  %s686_s28 = scalar_lea.hbm %s838_s3, 4096  ;;  %s26_s25 = int_to_ptr.vmem [resolvable:$true] %s25_s25 }
   0x2   :  { %p687_p0 = scmp.ne.s32.totalorder %s838_s3, %s686_s28  ;;  %p690_p1 = scmp.lt.u32.totalorder %s686_s28, %s838_s3 }
   0x4   :  { %p692_p2 = pnand %p690_p1, %p687_p0 }
   0x6   :  { %695 = shalt.err (!%p692_p2)
}
   0x7   :  { %s696_s10 = scalar_lea.vmem %s26_s25, 4096  ;;  %p701_p4 = scmp.lt.s32.totalorder %s26_s25, %s26_s25 }
   0x8   :  { %p697_p3 = scmp.ne.s32.totalorder %s26_s25, %s696_s10  ;;  %p702_p5 = scmp.lt.s32.totalorder %s696_s10, %s696_s10 }
   0xa   :  { %p703_p6 = por %p702_p5, %p701_p4 }
   0xc   :  { %p704_p7 = pnand %p703_p6, %p697_p3 }
   0xe   :  { %707 = shalt.err (!%p704_p7)
}
   0xf   :  { %s711_s11 = smov 128   ;;  %s712_s12 = smov 8  }
  0x10   :  { %31 = dma.hbm_to_vmem [thread:$0]  %s838_s3, 4096, %s26_s25, [#allocation4], %s711_s11, %s711_s11, %s712_s12  }
  0x11   :  { %708 = dma.done.wait [#allocation4], 4096  }
  0x12   :  { %709 = vsyncadd [#allocation4], 4294963200  ;;  %v713_v0 = vmov 0   ;;  %v619_v1 = vld [vmem:[%s836_s1 + $0x4] ss:$8 sps:$4 sm:$0xff]   ;;  %vm67_vm0 = vcmask 130048   ;;  %v47_v48 = vlaneseq }
  0x13   :  { %103 = vmatprep.mubr.bf16.mxu0 %v713_v0  ;;  %v621_v2 = vld [vmem:[%s836_s1] ss:$8 sps:$4 sm:$0xff]   ;;  %71 = vmatprep.subr.bf16.mxu0 %v619_v1  ;;  %v622_v4 = vld [vmem:[#allocation3 + $0x4] ss:$8 sps:$4 sm:$0xff]   ;;  %v625_v6 = vld [vmem:[#allocation3 + $0x14] ss:$8 sps:$4 sm:$0xff]  }
  0x14   :  { %v42_v3 = vld [vmem:[%s835_s0] sm:$0xf]  ;;  %72 = vmatpush1.bf16.msra.mxu0 %v621_v2  ;;  %320 = vmatprep.subr.bf16.mxu1 %v622_v4  ;;  %v627_v7 = vld [vmem:[#allocation3 + $0x10] ss:$8 sps:$4 sm:$0xff]   ;;  %v628_v8 = vld [vmem:[#allocation3 + $0x24] ss:$8 sps:$4 sm:$0xff]  }
  0x15   :  { %v624_v5 = vld [vmem:[#allocation3] ss:$8 sps:$4 sm:$0xff]   ;;  %v631_v10 = vld [vmem:[#allocation3 + $0x34] ss:$8 sps:$4 sm:$0xff]   ;;  %v633_v11 = vld [vmem:[#allocation3 + $0x30] ss:$8 sps:$4 sm:$0xff]  }
  0x16   :  { %321 = vmatpush1.bf16.msra.mxu1 %v624_v5  ;;  %v630_v9 = vld [vmem:[#allocation3 + $0x20] ss:$8 sps:$4 sm:$0xff]   ;;  %v634_v12 = vld [vmem:[#allocation3 + $0x44] ss:$8 sps:$4 sm:$0xff]   ;;  %v637_v14 = vld [vmem:[#allocation3 + $0x54] ss:$8 sps:$4 sm:$0xff]  }
  0x17   :  { %544 = vmatmul.mubr.msk.bf16.vlgmr.msra.gmra.mrb[0].mxu0 %vm67_vm0, %v42_v3  ;;  %322 = vmatprep.subr.bf16.mxu1 %v625_v6  ;;  %v636_v13 = vld [vmem:[#allocation3 + $0x40] ss:$8 sps:$4 sm:$0xff]   ;;  %v639_v15 = vld [vmem:[#allocation3 + $0x50] ss:$8 sps:$4 sm:$0xff]   ;;  %v640_v16 = vld [vmem:[#allocation3 + $0x64] ss:$8 sps:$4 sm:$0xff]  }
  0x18   :  { %v642_v17 = vld [vmem:[#allocation3 + $0x60] ss:$8 sps:$4 sm:$0xff]   ;;  %v643_v18 = vld [vmem:[#allocation3 + $0x74] ss:$8 sps:$4 sm:$0xff]   ;;  %v645_v19 = vld [vmem:[#allocation3 + $0x70] ss:$8 sps:$4 sm:$0xff]  }
  0x19   :  { %v646_v20 = vld [vmem:[#allocation3 + $0x84] ss:$8 sps:$4 sm:$0xff]   ;;  %v648_v21 = vld [vmem:[#allocation3 + $0x80] ss:$8 sps:$4 sm:$0xff]   ;;  %v649_v22 = vld [vmem:[#allocation3 + $0x94] ss:$8 sps:$4 sm:$0xff]  }
  0x1a   :  { %323 = vmatpush1.bf16.msra.mxu1 %v627_v7  ;;  %v651_v23 = vld [vmem:[#allocation3 + $0x90] ss:$8 sps:$4 sm:$0xff]   ;;  %v652_v24 = vld [vmem:[#allocation3 + $0xa4] ss:$8 sps:$4 sm:$0xff]   ;;  %v654_v25 = vld [vmem:[#allocation3 + $0xa0] ss:$8 sps:$4 sm:$0xff]  }
  0x1b   :  { %324 = vmatprep.subr.bf16.mxu1 %v628_v8  ;;  %v655_v26 = vld [vmem:[#allocation3 + $0xb4] ss:$8 sps:$4 sm:$0xff]   ;;  %v657_v27 = vld [vmem:[#allocation3 + $0xb0] ss:$8 sps:$4 sm:$0xff]   ;;  %v658_v28 = vld [vmem:[#allocation3 + $0xc4] ss:$8 sps:$4 sm:$0xff]  }
  0x1c   :  { %v660_v29 = vld [vmem:[#allocation3 + $0xc0] ss:$8 sps:$4 sm:$0xff]   ;;  %v661_v30 = vld [vmem:[#allocation3 + $0xd4] ss:$8 sps:$4 sm:$0xff]   ;;  %v663_v31 = vld [vmem:[#allocation3 + $0xd0] ss:$8 sps:$4 sm:$0xff]  }
  0x1d   :  { %v664_v32 = vld [vmem:[#allocation3 + $0xe4] ss:$8 sps:$4 sm:$0xff]   ;;  %v666_v33 = vld [vmem:[#allocation3 + $0xe0] ss:$8 sps:$4 sm:$0xff]   ;;  %v667_v34 = vld [vmem:[#allocation3 + $0xf4] ss:$8 sps:$4 sm:$0xff]  }
  0x1e   :  { %325 = vmatpush1.bf16.msra.mxu1 %v630_v9  ;;  %v669_v35 = vld [vmem:[#allocation3 + $0xf0] ss:$8 sps:$4 sm:$0xff]   ;;  %v670_v36 = vld [vmem:[%s840_s5 + $0x40] sm:$0xff]   ;;  %v672_v38 = vld [vmem:[%s840_s5 + $0x48] sm:$0xff]   ;;  %v48_v49 = vshrl.u32 %v47_v48, 7  ;;  %vm535_vm1 = vcmask 7168  }
  0x1f   :  { %326 = vmatprep.subr.bf16.mxu1 %v631_v10  ;;  %v671_v37 = vld [vmem:[%s840_s5] sm:$0xff]   ;;  %593 = vmatprep.subr.bf16.mxu0 %v670_v36  ;;  %v673_v39 = vld [vmem:[%s840_s5 + $0x8] sm:$0xff]   ;;  %v674_v40 = vld [vmem:[%s840_s5 + $0x50] sm:$0xff]  }
  0x20   :  { %594 = vmatpush3.bf16.msra.mxu0 %v671_v37  ;;  %v675_v41 = vld [vmem:[%s840_s5 + $0x10] sm:$0xff]   ;;  %v676_v42 = vld [vmem:[%s840_s5 + $0x58] sm:$0xff]   ;;  %v678_v44 = vld [vmem:[%s840_s5 + $0x60] sm:$0xff]   ;;  %v49_v50 = vsub.s32 0, %v48_v49  ;;  %v53_v52 = vsub.s32 1, %v48_v49 }
  0x21   :  { %595 = vmatprep.subr.bf16.mxu0 %v672_v38  ;;  %v677_v43 = vld [vmem:[%s840_s5 + $0x18] sm:$0xff]   ;;  %v679_v45 = vld [vmem:[%s840_s5 + $0x20] sm:$0xff]   ;;  %v680_v46 = vld [vmem:[%s840_s5 + $0x68] sm:$0xff]  }
  0x22   :  { %327 = vmatpush1.bf16.msra.mxu1 %v633_v11  ;;  %v681_v47 = vld [vmem:[%s840_s5 + $0x28] sm:$0xff]   ;;  %v45_v51 = vld [vmem:[%s837_s2] sm:$0x3]  ;;  %v682_v1 = vld [vmem:[%s840_s5 + $0x70] sm:$0xff]  }
  0x23   :  { %328 = vmatprep.subr.bf16.mxu1 %v634_v12  ;;  %v50_v53 = vrot.slane %v45_v51, %v49_v50  ;;  %v54_v54 = vrot.slane %v45_v51, %v53_v52  ;;  %v683_v2 = vld [vmem:[%s840_s5 + $0x30] sm:$0xff]   ;;  %v684_v3 = vld [vmem:[%s840_s5 + $0x78] sm:$0xff]   ;;  %v148_v5 = vld [vmem:[%s839_s4] sm:$0x3] }
  0x24   :  { %596 = vmatpush3.bf16.msra.mxu0 %v673_v39  ;;  %v685_v4 = vld [vmem:[%s840_s5 + $0x38] sm:$0xff]   ;;  %v153_v6 = vrot.slane %v148_v5, %v49_v50  ;;  %v157_v7 = vrot.slane %v148_v5, %v53_v52 }
  0x25   :  { %597 = vmatprep.subr.bf16.mxu0 %v674_v40 }
  0x26   :  { %329 = vmatpush1.bf16.msra.mxu1 %v636_v13 }
  0x27   :  { %330 = vmatprep.subr.bf16.mxu1 %v637_v14 }
  0x28   :  { %598 = vmatpush3.bf16.msra.mxu0 %v675_v41 }
  0x29   :  { %599 = vmatprep.subr.bf16.mxu0 %v676_v42 }
  0x2a   :  { %331 = vmatpush1.bf16.msra.mxu1 %v639_v15 }
  0x2b   :  { %332 = vmatprep.subr.bf16.mxu1 %v640_v16 }
  0x2c   :  { %600 = vmatpush3.bf16.msra.mxu0 %v677_v43 }
  0x2d   :  { %601 = vmatprep.subr.bf16.mxu0 %v678_v44 }
  0x2e   :  { %333 = vmatpush1.bf16.msra.mxu1 %v642_v17 }
  0x2f   :  { %334 = vmatprep.subr.bf16.mxu1 %v643_v18 }
  0x30   :  { %602 = vmatpush3.bf16.msra.mxu0 %v679_v45 }
  0x31   :  { %603 = vmatprep.subr.bf16.mxu0 %v680_v46 }
  0x32   :  { %335 = vmatpush1.bf16.msra.mxu1 %v645_v19  ;;  %v398_v19 = vstv %s841_s6 }
  0x33   :  { %336 = vmatprep.subr.bf16.mxu1 %v646_v20 }
  0x34   :  { %604 = vmatpush3.bf16.msra.mxu0 %v681_v47 }
  0x35   :  { %605 = vmatprep.subr.bf16.mxu0 %v682_v1 }
  0x36   :  { %337 = vmatpush1.bf16.msra.mxu1 %v648_v21 }
  0x37   :  { %338 = vmatprep.subr.bf16.mxu1 %v649_v22 }
  0x38   :  { %606 = vmatpush3.bf16.msra.mxu0 %v683_v2 }
  0x39   :  { %607 = vmatprep.subr.bf16.mxu0 %v684_v3 }
  0x3a   :  { %339 = vmatpush1.bf16.msra.mxu1 %v651_v23 }
  0x3b   :  { %340 = vmatprep.subr.bf16.mxu1 %v652_v24 }
  0x3c   :  { %608 = vmatpush3.bf16.msra.mxu0 %v685_v4 }
  0x3e   :  { %341 = vmatpush1.bf16.msra.mxu1 %v654_v25 }
  0x3f   :  { %342 = vmatprep.subr.bf16.mxu1 %v655_v26 }
  0x42   :  { %343 = vmatpush1.bf16.msra.mxu1 %v657_v27 }
  0x43   :  { %344 = vmatprep.subr.bf16.mxu1 %v658_v28 }
  0x46   :  { %345 = vmatpush1.bf16.msra.mxu1 %v660_v29 }
  0x47   :  { %346 = vmatprep.subr.bf16.mxu1 %v661_v30 }
  0x4a   :  { %347 = vmatpush1.bf16.msra.mxu1 %v663_v31 }
  0x4b   :  { %348 = vmatprep.subr.bf16.mxu1 %v664_v32 }
  0x4e   :  { %349 = vmatpush1.bf16.msra.mxu1 %v666_v33 }
  0x4f   :  { %350 = vmatprep.subr.bf16.mxu1 %v667_v34 }
  0x52   :  { %351 = vmatpush1.bf16.msra.mxu1 %v669_v35 }
  0xea   :  { %v105_v55 = vpop.f32.mrb[0].mxu0 }
  0xeb   :  { %v106_v56 = vadd.f32 %v105_v55, %v50_v53  ;;  %v107_v57 = vpop.f32.mrb[1].mxu0 }
  0xec   :  { %v108_v58 = vadd.f32 %v107_v57, %v54_v54  ;;  %v109_v59 = vpop.f32.mrb[2].mxu0 }
  0xed   :  { %v112_v60 = vmax.f32 %v106_v56, 0.0  ;;  %v110_v61 = vpop.f32.mrb[3].mxu0 }
  0xee   :  { %v113_v62 = vmax.f32 %v108_v58, 0.0 }
  0xef   :  { %v114_v0 = vpack.c.bf16 %v112_v60, %v112_v60 }
  0xf0   :  { %v115_v63 = vpack.c.bf16 %v113_v62, %v113_v62 }
  0xf2   :  { %352 = vmatprep.mubr.bf16.mxu1 %v115_v63 }
  0xf3   :  { %353 = vmatmul.mubr.bf16.vlgmr.msra.gmra.mrb[0].mxu1 %v114_v0 }
 0x1c6   :  { %v354_v8 = vpop.f32.mrb[0].mxu1 }
 0x1c7   :  { %v355_v9 = vadd.f32 %v354_v8, %v153_v6  ;;  %v356_v10 = vpop.f32.mrb[1].mxu1 }
 0x1c8   :  { %v357_v11 = vadd.f32 %v356_v10, %v157_v7  ;;  %v358_v12 = vpop.f32.mrb[2].mxu1 }
 0x1c9   :  { %v361_v13 = vmax.f32 %v355_v9, 0.0  ;;  %v359_v14 = vpop.f32.mrb[3].mxu1 }
 0x1ca   :  { %v362_v15 = vmax.f32 %v357_v11, 0.0 }
 0x1cb   :  { %v363_v17 = vpack.c.bf16 %v361_v13, %v361_v13 }
 0x1cc   :  { %v364_v16 = vpack.c.bf16 %v362_v15, %v362_v15 }
 0x1ce   :  { %527 = vmatprep.mubr.bf16.mxu0 %v364_v16 }
 0x1cf   :  { %528 = vmatmul.mubr.bf16.vlgmr.msra.gmra.mrb[4].mxu0 %v363_v17 }
 0x2a2   :  { %v609_v18 = vpop.f32.mrb[4].mxu0 }
 0x2a3   :  { %v610_v20 = vpop.f32.mrb[5].mxu0 }
 0x2a4   :  { %v611_v21 = vadd.f32 %v610_v20, %v609_v18  ;;  %v612_v22 = vpop.f32.mrb[6].mxu0 }
 0x2a5   :  { %v613_v23 = vpop.f32.mrb[7].mxu0 }
 0x2a6   :  { %v530_v24 = vadd.f32 %v611_v21, %v398_v19 }
 0x2a8   :  { %536 = vst.msk [vmem:[%s842_s7] sm:$0xff] %vm535_vm1, %v530_v24 }
 0x2a9   :  { %541 = vsyncpa [#allocation4], 1 }

</bundles_post_ra>
